<compile_context>
chip_gen: v6e
topology: v6e:2x2x1
jax: 0.10.0
libtpu: 0.0.40
codegen_flags: <defaults>
</compile_context>

<pallas_src>
import jax
import jax.numpy as jnp
from jax.experimental import pallas as pl
from jax.experimental.pallas import tpu as pltpu

LANES = 128
MAX_BLOCK_ROWS = 512     # (512, 128) f32 tile = 256 KiB; 2 inputs x 2 bufs ~= 1 MiB VMEM
NSPLIT_LARGE = 2         # expose both TensorCores on v7x via a "parallel" grid axis
PAD_LOGIT = -100.0       # sigmoid(-100) ~= 0 and log1p(exp(-100)) ~= 0 -> padding self-masks


def _partial_sums_kernel(x_ref, t_ref, out_ref):
    """Accumulate partial sums of (bce, p*t, p, t) into a (1, 4, 8, 128) block."""
    i = pl.program_id(1)

    @pl.when(i == 0)
    def _():
        out_ref[...] = jnp.zeros_like(out_ref)

    x = x_ref[...]
    t = t_ref[...]

    # Share e = exp(-|x|) between the numerically stable BCE-with-logits term
    #   max(x, 0) - x*t + log1p(exp(-|x|))      (matches torch.nn.BCEWithLogitsLoss)
    # and the sigmoid  p = [x >= 0 ? 1 : e] / (1 + e).
    e = jnp.exp(-jnp.abs(x))
    bce = jnp.maximum(x, 0.0) - x * t + jnp.log1p(e)
    p = jnp.where(x >= 0.0, 1.0, e) / (1.0 + e)

    def _red8(v):
        # (block_rows, 128) -> (8, 128): sublane-tile-aligned vector adds only (VPU);
        # the cross-lane reduction is deferred to the tiny wrapper epilogue.
        return jnp.sum(v.reshape(-1, 8, LANES), axis=0)

    out_ref[0, 0, :, :] += _red8(bce)
    out_ref[0, 1, :, :] += _red8(p * t)
    out_ref[0, 2, :, :] += _red8(p)
    out_ref[0, 3, :, :] += _red8(t)


def combined_dice_bce_with_logits_loss(logits, targets, *, weight=0.0, smooth=1.0):
    """JAX/Pallas equivalent of CombinedDiceBCEWithLogitsLoss.forward."""
    x = logits.reshape(-1).astype(jnp.float32)
    t = targets.reshape(-1).astype(jnp.float32)
    n = x.shape[0]

    # Row count, padded so the block's last two dims are (multiple of 8, 128).
    rows = max(-(-n // LANES), 1)
    rows = -(-rows // 8) * 8

    if rows <= MAX_BLOCK_ROWS:
        # Small-input fast path: one grid step, one block covering everything.
        block_rows, nsplit, n_inner = rows, 1, 1
    else:
        block_rows = MAX_BLOCK_ROWS
        nb = -(-rows // block_rows)
        nsplit = NSPLIT_LARGE if nb % NSPLIT_LARGE == 0 else 1
        n_inner = nb // nsplit
        rows = nb * block_rows

    pad = rows * LANES - n
    # Pad logits with a large negative value and targets with 0 so padded elements
    # contribute ~0 to all four partial sums -> no separate mask stream needed.
    x = jnp.pad(x, (0, pad), constant_values=PAD_LOGIT)
    t = jnp.pad(t, (0, pad), constant_values=0.0)
    x2 = x.reshape(rows, LANES)
    t2 = t.reshape(rows, LANES)

    in_map = lambda o, i: (o * n_inner + i, 0)

    partials = pl.pallas_call(
        _partial_sums_kernel,
        out_shape=jax.ShapeDtypeStruct((nsplit, 4, 8, LANES), jnp.float32),
        grid_spec=pltpu.PrefetchScalarGridSpec(
            num_scalar_prefetch=0,
            grid=(nsplit, n_inner),
            in_specs=[
                pl.BlockSpec((block_rows, LANES), in_map),
                pl.BlockSpec((block_rows, LANES), in_map),
            ],
            out_specs=pl.BlockSpec((1, 4, 8, LANES), lambda o, i: (o, 0, 0, 0)),
        ),
        compiler_params=pltpu.CompilerParams(
            dimension_semantics=("parallel", "arbitrary")),
    )(x2, t2)

    # Tiny scalar epilogue: reduce the lane-dense per-split partials and combine.
    sums = jnp.sum(partials, axis=(0, 2, 3))            # (4,) = [Σbce, Σp·t, Σp, Σt]
    bce_mean = sums[0] / n
    dice = (2.0 * sums[1] + smooth) / (sums[2] + sums[3] + smooth)
    return bce_mean + weight * (1.0 - dice)


def _reference(logits, targets, weight, smooth):
    x = logits.astype(jnp.float32).reshape(-1)
    t = targets.astype(jnp.float32).reshape(-1)
    bce = jnp.mean(jnp.maximum(x, 0.0) - x * t + jnp.log1p(jnp.exp(-jnp.abs(x))))
    p = jax.nn.sigmoid(x)
    dice = (2.0 * jnp.sum(p * t) + smooth) / (jnp.sum(p) + jnp.sum(t) + smooth)
    return bce + weight * (1.0 - dice)


if __name__ == "__main__":
    key = jax.random.PRNGKey(0)
    k1, k2 = jax.random.split(key)

    # NCHW logits and binary ground-truth labels, small shapes.
    logits = jax.random.normal(k1, (2, 4, 16, 16), dtype=jnp.float32)
    targets = jax.random.bernoulli(k2, 0.5, (2, 4, 16, 16)).astype(jnp.float32)

    # Deterministic "parameters": the module only has `weight` (and smooth=1).
    weight = 0.5
    smooth = 1.0

    loss = combined_dice_bce_with_logits_loss(logits, targets, weight=weight, smooth=smooth)
    loss = jax.block_until_ready(loss)

    ref = _reference(logits, targets, weight, smooth)
    assert jnp.allclose(loss, ref, rtol=1e-5, atol=1e-5), (loss, ref)

    print("KERNEL_OK")
</pallas_src>

<mosaic_0001>
module attributes {stable_mosaic.version = 11 : i64} {
  func.func @_partial_sums_kernel(%arg0: i32, %arg1: i32, %arg2: memref<16x128xf32, #tpu.memory_space<vmem>>, %arg3: memref<16x128xf32, #tpu.memory_space<vmem>>, %arg4: memref<1x4x8x128xf32, #tpu.memory_space<vmem>>) attributes {dimension_semantics = [#tpu.dimension_semantics<parallel>, #tpu.dimension_semantics<arbitrary>], iteration_bounds = array<i64: 1, 1>, scalar_prefetch = 0 : i64, scratch_operands = 0 : i64, tpu.core_type = #tpu.core_type<tc>, window_params = [{transform_indices = @transform_0, window_bounds = array<i64: 16, 128>}, {transform_indices = @transform_1, window_bounds = array<i64: 16, 128>}, {transform_indices = @transform_2, window_bounds = array<i64: 1, 4, 8, 128>}]} {
    %c0_i32 = arith.constant 0 : i32
    %0 = arith.cmpi eq, %arg1, %c0_i32 : i32
    %1 = arith.extui %0 : i1 to i32
    %c0_i32_0 = arith.constant 0 : i32
    %2 = arith.cmpi ne, %1, %c0_i32_0 : i32
    scf.if %2 {
      %cst_41 = arith.constant 0.000000e+00 : f32
      %55 = vector.broadcast %cst_41 : f32 to vector<1x4x8x128xf32>
      %c0_42 = arith.constant 0 : index
      %c0_43 = arith.constant 0 : index
      %c0_44 = arith.constant 0 : index
      %c0_45 = arith.constant 0 : index
      %56 = vector.load %arg4[%c0_42, %c0_43, %c0_44, %c0_45] : memref<1x4x8x128xf32, #tpu.memory_space<vmem>>, vector<1x4x8x128xf32>
      tpu.vector_store %arg4[%c0_42, %c0_43, %c0_44, %c0_45], %55 {strides = array<i32>} : memref<1x4x8x128xf32, #tpu.memory_space<vmem>>, vector<1x4x8x128xf32>,
    } else {
    }
    %c0 = arith.constant 0 : index
    %c0_1 = arith.constant 0 : index
    %3 = vector.load %arg2[%c0, %c0_1] : memref<16x128xf32, #tpu.memory_space<vmem>>, vector<16x128xf32>
    %c0_2 = arith.constant 0 : index
    %c0_3 = arith.constant 0 : index
    %4 = vector.load %arg3[%c0_2, %c0_3] : memref<16x128xf32, #tpu.memory_space<vmem>>, vector<16x128xf32>
    %5 = math.absf %3 : vector<16x128xf32>
    %cst = arith.constant 0.000000e+00 : f32
    %6 = vector.broadcast %cst : f32 to vector<16x128xf32>
    %7 = arith.subf %6, %5 : vector<16x128xf32>
    %8 = math.exp %7 : vector<16x128xf32>
    %cst_4 = arith.constant 0.000000e+00 : f32
    %9 = vector.broadcast %cst_4 : f32 to vector<16x128xf32>
    %10 = arith.maximumf %3, %9 : vector<16x128xf32>
    %11 = arith.mulf %3, %4 : vector<16x128xf32>
    %12 = arith.subf %10, %11 : vector<16x128xf32>
    %13 = math.log1p %8 : vector<16x128xf32>
    %14 = arith.addf %12, %13 : vector<16x128xf32>
    %cst_5 = arith.constant 0.000000e+00 : f32
    %15 = vector.broadcast %cst_5 : f32 to vector<16x128xf32>
    %16 = arith.cmpf oge, %3, %15 : vector<16x128xf32>
    %cst_6 = arith.constant 1.000000e+00 : f32
    %17 = vector.broadcast %cst_6 : f32 to vector<16x128xf32>
    %18 = arith.select %16, %17, %8 : vector<16x128xi1>, vector<16x128xf32>
    %cst_7 = arith.constant 1.000000e+00 : f32
    %19 = vector.broadcast %cst_7 : f32 to vector<16x128xf32>
    %20 = arith.addf %19, %8 : vector<16x128xf32>
    %21 = arith.divf %18, %20 : vector<16x128xf32>
    %c0_8 = arith.constant 0 : index
    %c0_9 = arith.constant 0 : index
    %c0_10 = arith.constant 0 : index
    %c0_11 = arith.constant 0 : index
    %22 = vector.load %arg4[%c0_8, %c0_9, %c0_10, %c0_11] : memref<1x4x8x128xf32, #tpu.memory_space<vmem>>, vector<1x1x8x128xf32>
    %23 = vector.shape_cast %22 : vector<1x1x8x128xf32> to vector<8x128xf32>
    %24 = vector.shape_cast %14 : vector<16x128xf32> to vector<2x8x128xf32>
    %cst_12 = arith.constant dense<0.000000e+00> : vector<8x128xf32>
    %25 = vector.multi_reduction <add>, %24, %cst_12 [0] : vector<2x8x128xf32> to vector<8x128xf32>
    %26 = arith.addf %23, %25 : vector<8x128xf32>
    %c0_13 = arith.constant 0 : index
    %c0_14 = arith.constant 0 : index
    %c0_15 = arith.constant 0 : index
    %c0_16 = arith.constant 0 : index
    %27 = vector.load %arg4[%c0_13, %c0_14, %c0_15, %c0_16] : memref<1x4x8x128xf32, #tpu.memory_space<vmem>>, vector<1x1x8x128xf32>
    %28 = vector.shape_cast %27 : vector<1x1x8x128xf32> to vector<8x128xf32>
    %29 = vector.shape_cast %26 : vector<8x128xf32> to vector<1x1x8x128xf32>
    tpu.vector_store %arg4[%c0_13, %c0_14, %c0_15, %c0_16], %29 {strides = array<i32>} : memref<1x4x8x128xf32, #tpu.memory_space<vmem>>, vector<1x1x8x128xf32>,
    %c0_17 = arith.constant 0 : index
    %c1 = arith.constant 1 : index
    %c0_18 = arith.constant 0 : index
    %c0_19 = arith.constant 0 : index
    %30 = vector.load %arg4[%c0_17, %c1, %c0_18, %c0_19] : memref<1x4x8x128xf32, #tpu.memory_space<vmem>>, vector<1x1x8x128xf32>
    %31 = vector.shape_cast %30 : vector<1x1x8x128xf32> to vector<8x128xf32>
    %32 = arith.mulf %21, %4 : vector<16x128xf32>
    %33 = vector.shape_cast %32 : vector<16x128xf32> to vector<2x8x128xf32>
    %cst_20 = arith.constant dense<0.000000e+00> : vector<8x128xf32>
    %34 = vector.multi_reduction <add>, %33, %cst_20 [0] : vector<2x8x128xf32> to vector<8x128xf32>
    %35 = arith.addf %31, %34 : vector<8x128xf32>
    %c0_21 = arith.constant 0 : index
    %c1_22 = arith.constant 1 : index
    %c0_23 = arith.constant 0 : index
    %c0_24 = arith.constant 0 : index
    %36 = vector.load %arg4[%c0_21, %c1_22, %c0_23, %c0_24] : memref<1x4x8x128xf32, #tpu.memory_space<vmem>>, vector<1x1x8x128xf32>
    %37 = vector.shape_cast %36 : vector<1x1x8x128xf32> to vector<8x128xf32>
    %38 = vector.shape_cast %35 : vector<8x128xf32> to vector<1x1x8x128xf32>
    tpu.vector_store %arg4[%c0_21, %c1_22, %c0_23, %c0_24], %38 {strides = array<i32>} : memref<1x4x8x128xf32, #tpu.memory_space<vmem>>, vector<1x1x8x128xf32>,
    %c0_25 = arith.constant 0 : index
    %c2 = arith.constant 2 : index
    %c0_26 = arith.constant 0 : index
    %c0_27 = arith.constant 0 : index
    %39 = vector.load %arg4[%c0_25, %c2, %c0_26, %c0_27] : memref<1x4x8x128xf32, #tpu.memory_space<vmem>>, vector<1x1x8x128xf32>
    %40 = vector.shape_cast %39 : vector<1x1x8x128xf32> to vector<8x128xf32>
    %41 = vector.shape_cast %21 : vector<16x128xf32> to vector<2x8x128xf32>
    %cst_28 = arith.constant dense<0.000000e+00> : vector<8x128xf32>
    %42 = vector.multi_reduction <add>, %41, %cst_28 [0] : vector<2x8x128xf32> to vector<8x128xf32>
    %43 = arith.addf %40, %42 : vector<8x128xf32>
    %c0_29 = arith.constant 0 : index
    %c2_30 = arith.constant 2 : index
    %c0_31 = arith.constant 0 : index
    %c0_32 = arith.constant 0 : index
    %44 = vector.load %arg4[%c0_29, %c2_30, %c0_31, %c0_32] : memref<1x4x8x128xf32, #tpu.memory_space<vmem>>, vector<1x1x8x128xf32>
    %45 = vector.shape_cast %44 : vector<1x1x8x128xf32> to vector<8x128xf32>
    %46 = vector.shape_cast %43 : vector<8x128xf32> to vector<1x1x8x128xf32>
    tpu.vector_store %arg4[%c0_29, %c2_30, %c0_31, %c0_32], %46 {strides = array<i32>} : memref<1x4x8x128xf32, #tpu.memory_space<vmem>>, vector<1x1x8x128xf32>,
    %c0_33 = arith.constant 0 : index
    %c3 = arith.constant 3 : index
    %c0_34 = arith.constant 0 : index
    %c0_35 = arith.constant 0 : index
    %47 = vector.load %arg4[%c0_33, %c3, %c0_34, %c0_35] : memref<1x4x8x128xf32, #tpu.memory_space<vmem>>, vector<1x1x8x128xf32>
    %48 = vector.shape_cast %47 : vector<1x1x8x128xf32> to vector<8x128xf32>
    %49 = vector.shape_cast %4 : vector<16x128xf32> to vector<2x8x128xf32>
    %cst_36 = arith.constant dense<0.000000e+00> : vector<8x128xf32>
    %50 = vector.multi_reduction <add>, %49, %cst_36 [0] : vector<2x8x128xf32> to vector<8x128xf32>
    %51 = arith.addf %48, %50 : vector<8x128xf32>
    %c0_37 = arith.constant 0 : index
    %c3_38 = arith.constant 3 : index
    %c0_39 = arith.constant 0 : index
    %c0_40 = arith.constant 0 : index
    %52 = vector.load %arg4[%c0_37, %c3_38, %c0_39, %c0_40] : memref<1x4x8x128xf32, #tpu.memory_space<vmem>>, vector<1x1x8x128xf32>
    %53 = vector.shape_cast %52 : vector<1x1x8x128xf32> to vector<8x128xf32>
    %54 = vector.shape_cast %51 : vector<8x128xf32> to vector<1x1x8x128xf32>
    tpu.vector_store %arg4[%c0_37, %c3_38, %c0_39, %c0_40], %54 {strides = array<i32>} : memref<1x4x8x128xf32, #tpu.memory_space<vmem>>, vector<1x1x8x128xf32>,
    return
  }
  func.func @transform_0(%arg0: i32, %arg1: i32) -> (i32, i32) {
    %c1_i32 = arith.constant 1 : i32
    %0 = arith.muli %arg0, %c1_i32 : i32
    %1 = arith.addi %0, %arg1 : i32
    %c0_i32 = arith.constant 0 : i32
    %c0_i32_0 = arith.constant 0 : i32
    return %1, %c0_i32 : i32, i32
  }
  func.func @transform_1(%arg0: i32, %arg1: i32) -> (i32, i32) {
    %c1_i32 = arith.constant 1 : i32
    %0 = arith.muli %arg0, %c1_i32 : i32
    %1 = arith.addi %0, %arg1 : i32
    %c0_i32 = arith.constant 0 : i32
    %c0_i32_0 = arith.constant 0 : i32
    return %1, %c0_i32 : i32, i32
  }
  func.func @transform_2(%arg0: i32, %arg1: i32) -> (i32, i32, i32, i32) {
    %c0_i32 = arith.constant 0 : i32
    %c0_i32_0 = arith.constant 0 : i32
    %c0_i32_1 = arith.constant 0 : i32
    %c0_i32_2 = arith.constant 0 : i32
    return %arg0, %c0_i32, %c0_i32_0, %c0_i32_1 : i32, i32, i32, i32
  }
}

</mosaic_0001>

<bundles_post_ra>
// kernel: tpu_custom_call.1
= control target key start
LH: loop header
LB: loop body
LE: loop exit
PB: predicated region body
PF: predicated region fallthrough
CT: control target
= control target key end

     0   :  { %7 = vsyncpa [#allocation3], 0  ;;  %s269_s0 = inlined_call_operand.hbm [shape: f32[16,128], index: 0, kind: input, shape index: {}]   ;;  %s270_s1 = inlined_call_operand.hbm [shape: f32[16,128], index: 1, kind: input, shape index: {}]   ;;  %s271_s2 = inlined_call_operand.hbm [shape: f32[1,4,8,128], index: 2, kind: output, shape index: {}]  }
   0x1   :  { %8 = vsyncpa [#allocation6], 0 }
   0x2   :  { %9 = vsyncpa [#allocation4], 0  ;;  %s231_s9 = smov [#allocation2]  }
   0x3   :  { %s19_s10 = sshll.u32 %s231_s9, 4  ;;  %s20_s10 = int_to_ptr.vmem [resolvable:$true] %s19_s10 }
   0x4   :  { %s173_s11 = scalar_lea.vmem %s20_s10, 256  ;;  %p178_p1 = scmp.lt.s32.totalorder %s20_s10, %s20_s10 }
   0x5   :  { %p174_p0 = scmp.ne.s32.totalorder %s20_s10, %s173_s11  ;;  %p179_p2 = scmp.lt.s32.totalorder %s173_s11, %s173_s11 }
   0x7   :  { %p180_p3 = por %p179_p2, %p178_p1 }
   0x9   :  { %p181_p4 = pnand %p180_p3, %p174_p0 }
   0xb   :  { %184 = shalt.err (!%p181_p4)
}
   0xc   :  { %s232_s12 = smov 128   ;;  %s233_s13 = smov 8  }
   0xd   :  { %25 = dma.hbm_to_vmem [thread:$0]  %s269_s0, 256, %s20_s10, [#allocation3], %s232_s12, %s232_s12, %s233_s13  }
   0xe   :  { %s234_s16 = smov [#allocation5]  }
   0xf   :  { %s35_s17 = sshll.u32 %s234_s16, 4  ;;  %s36_s17 = int_to_ptr.vmem [resolvable:$true] %s35_s17 }
  0x10   :  { %s193_s18 = scalar_lea.vmem %s36_s17, 256  ;;  %p198_p6 = scmp.lt.s32.totalorder %s36_s17, %s36_s17 }
  0x11   :  { %p194_p5 = scmp.ne.s32.totalorder %s36_s17, %s193_s18  ;;  %p199_p7 = scmp.lt.s32.totalorder %s193_s18, %s193_s18 }
  0x13   :  { %p200_p8 = por %p199_p7, %p198_p6 }
  0x15   :  { %p201_p9 = pnand %p200_p8, %p194_p5 }
  0x17   :  { %204 = shalt.err (!%p201_p9)
}
  0x18   :  { %41 = dma.hbm_to_vmem [thread:$0]  %s270_s1, 256, %s36_s17, [#allocation6], %s232_s12, %s232_s12, %s233_s13  }
  0x19   :  { %225 = dma.done.wait [#allocation3], 256  }
  0x1a   :  { %226 = vsyncadd [#allocation3], 4294967040 }
  0x1b   :  { %227 = dma.done.wait [#allocation6], 256  }
  0x1c   :  { %228 = vsyncadd [#allocation6], 4294967040  ;;  %v60_v0 = vld [vmem:[#allocation2] sm:$0xff]  ;;  %v61_v1 = vld [vmem:[#allocation2 + $0x8] sm:$0xff]  ;;  %s235_s0 = smov [#allocation7]  }
  0x1d   :  { %v64_v2 = vand.u32 2147483647, %v60_v0  ;;  %v65_v3 = vand.u32 2147483647, %v61_v1  ;;  %v62_v4 = vld [vmem:[#allocation5] sm:$0xff]  ;;  %v63_v5 = vld [vmem:[#allocation5 + $0x8] sm:$0xff] }
  0x1e   :  { %v126_v8 = vadd.f32 %v63_v5, %v62_v4  ;;  %v72_v18 = vmax.f32 %v60_v0, 0.0  ;;  %v74_v19 = vmul.f32 %v62_v4, %v60_v0  ;;  %v73_v22 = vmax.f32 %v61_v1, 0.0  ;;  %s134_s1 = sshll.u32 %s235_s0, 4  ;;  %s135_s1 = int_to_ptr.vmem [resolvable:$true] %s134_s1 }
  0x1f   :  { %v66_v6 = vsub.f32 0.0, %v64_v2  ;;  %v67_v7 = vsub.f32 0.0, %v65_v3  ;;  %v75_v23 = vmul.f32 %v63_v5, %v61_v1  ;;  %vm98_vm0 = vcmp.ge.f32.partialorder %v60_v0, 0.0  ;;  %s205_s21 = scalar_lea.vmem %s135_s1, 512  ;;  %p210_p11 = scmp.lt.s32.totalorder %s135_s1, %s135_s1 }
  0x20   :  { %128 = vst [vmem:[#allocation7 + $0x18] sm:$0xff] %v126_v8  ;;  %vm99_vm1 = vcmp.ge.f32.partialorder %v61_v1, 0.0  ;;  %v76_v27 = vsub.f32 %v72_v18, %v74_v19  ;;  %p206_p10 = scmp.ne.s32.totalorder %s135_s1, %s205_s21  ;;  %p211_p12 = scmp.lt.s32.totalorder %s205_s21, %s205_s21 }
  0x21   :  { %v68_v9 = vmul.f32 1.442695, %v66_v6  ;;  %v70_v10 = vmul.f32 1.442695, %v67_v7  ;;  %v77_v31 = vsub.f32 %v73_v22, %v75_v23 }
  0x22   :  { %p212_p13 = por %p211_p12, %p210_p11 }
  0x23   :  { %153 = vpow2.f32 %v68_v9 }
  0x24   :  { %155 = vpow2.f32 %v70_v10  ;;  %p213_p0 = pnand %p212_p13, %p206_p10 }
  0x30   :  { %v154_v11 = vpop.eup %153 }
  0x31   :  { %v156_v12 = vpop.eup %155  ;;  %v78_v13 = vadd.f32 1.0, %v154_v11  ;;  %v81_v15 = vmul.f32 -0.5, %v154_v11  ;;  %v84_v20 = vand.u32 2147483647, %v154_v11  ;;  %v100_v29 = vsel %vm98_vm0, 1.0, %v154_v11 }
  0x32   :  { %v87_v14 = vadd.f32 1.0, %v156_v12  ;;  %v90_v16 = vmul.f32 -0.5, %v156_v12  ;;  %v93_v24 = vand.u32 2147483647, %v156_v12  ;;  %v101_v33 = vsel %vm99_vm1, 1.0, %v156_v12 }
  0x33   :  { %157 = vlog2.f32 %v78_v13  ;;  %v82_v17 = vadd.f32 1.0, %v81_v15  ;;  %vm85_vm2 = vcmp.lt.f32.partialorder %v84_v20, 0.0004427343 }
  0x34   :  { %159 = vlog2.f32 %v87_v14  ;;  %v91_v21 = vadd.f32 1.0, %v90_v16  ;;  %vm94_vm3 = vcmp.lt.f32.partialorder %v93_v24, 0.0004427343 }
  0x35   :  { %161 = vrcp.f32 %v78_v13  ;;  %v83_v25 = vmul.f32 %v154_v11, %v82_v17 }
  0x36   :  { %163 = vrcp.f32 %v87_v14  ;;  %v92_v28 = vmul.f32 %v156_v12, %v91_v21 }
  0x40   :  { %v158_v26 = vpop.eup %157 }
  0x41   :  { %v160_v30 = vpop.eup %159  ;;  %v80_v32 = vmul.f32 0.6931472, %v158_v26 }
  0x42   :  { %v162_v34 = vpop.eup %161  ;;  %v89_v35 = vmul.f32 0.6931472, %v160_v30 }
  0x43   :  { %v164_v36 = vpop.eup %163  ;;  %v86_v37 = vsel %vm85_vm2, %v83_v25, %v80_v32  ;;  %v105_v38 = vmul.f32 %v162_v34, %v100_v29 }
  0x44   :  { %v95_v39 = vsel %vm94_vm3, %v92_v28, %v89_v35  ;;  %v96_v40 = vadd.f32 %v86_v37, %v76_v27  ;;  %v107_v41 = vmul.f32 %v164_v36, %v101_v33 }
  0x45   :  { %v97_v42 = vadd.f32 %v95_v39, %v77_v31  ;;  %v114_v43 = vmul.f32 %v105_v38, %v62_v4 }
  0x46   :  { %v115_v44 = vmul.f32 %v107_v41, %v63_v5  ;;  %v121_v45 = vadd.f32 %v107_v41, %v105_v38 }
  0x47   :  { %v109_v46 = vadd.f32 %v97_v42, %v96_v40 }
  0x48   :  { %v116_v47 = vadd.f32 %v115_v44, %v114_v43  ;;  %123 = vst [vmem:[#allocation7 + $0x10] sm:$0xff] %v121_v45 }
  0x49   :  { %111 = vst [vmem:[#allocation7] sm:$0xff] %v109_v46 }
  0x4a   :  { %118 = vst [vmem:[#allocation7 + $0x8] sm:$0xff] %v116_v47 }
  0x4b   :  { %216 = shalt.err (!%p213_p0)
}
  0x4c   :  { %140 = dma.vmem_to_hbm [thread:$0]  %s135_s1, 512, %s271_s2, [#allocation4], %s232_s12, %s232_s12, %s233_s13  }
  0x4d   :  { %229 = dma.done.wait [#allocation4], 512  }
  0x4e   :  { %230 = vsyncadd [#allocation4], 4294966784 }
  0x4f   :  { %144 = vsyncpa [#allocation3], 1 }
  0x50   :  { %145 = vsyncpa [#allocation6], 1 }
  0x51   :  { %146 = vsyncpa [#allocation4], 1 }

</bundles_post_ra>
